<compile_context>
chip_gen: v5e
topology: v5e:2x2
jax: 0.10.0
libtpu: 0.0.40
codegen_flags: <defaults>
</compile_context>

<pallas_src>
import functools
import numpy as np
import jax
import jax.numpy as jnp
from jax.experimental import pallas as pl
from jax.experimental.pallas import tpu as pltpu

# ---------------------- model config (torch defaults) ------------------------
H, W = 16, 16
HW = H * W                      # 256 -- per-sample lane block
WR = W // 2 + 1                 # 9   -- valid half-spectrum columns
IN_CH = 1
PROJ_CH = 4
HID_CH = 8
MODE = 256
MAX_FOLD = 3
FOLD = min(H // abs(MODE), MAX_FOLD) if H // abs(MODE) > 0 else 1
assert FOLD == 1 and MODE > 0    # code below is specialized to the default config

TAPS = tuple((dy, dx) for dy in (-1, 0, 1) for dx in (-1, 0, 1))

N_BLOCKS = 12
WROWS = 48                       # weight-slab rows per block
BROWS = 48                       # bias-slab rows per block
ROW_FRE, ROW_FIM, ROW_GI = 0, HW, 2 * HW   # row offsets inside the bf16 DFT slab

_SQRT_2_OVER_PI = 0.7978845608028654
_GELU_C = 0.044715


# ------------------------------ dense DFT operators ---------------------------
@functools.lru_cache(maxsize=None)
def _dft_operators():
    """F_re, F_im: (256,256) rfft2 operators on the padded 16x16 spectral grid
    (spectral columns >= 9 are zero).  G: (256,256) irfft2 operator (real input,
    backward norm) whose rows for spectral columns >= 9 are zero."""
    hh, ww = np.arange(H), np.arange(W)
    mm, kk = np.arange(H), np.arange(WR)
    ph = (2.0 * np.pi * np.outer(hh, mm) / H)[:, None, :, None] + \
         (2.0 * np.pi * np.outer(ww, kk) / W)[None, :, None, :]      # (h,w,m,k)
    fre = np.zeros((H, W, H, W), np.float64)
    fim = np.zeros((H, W, H, W), np.float64)
    fre[:, :, :, :WR] = np.cos(ph)
    fim[:, :, :, :WR] = -np.sin(ph)

    pp = np.arange(H)
    wgt = np.full(WR, 2.0)
    wgt[0] = 1.0
    wgt[-1] = 1.0                                # Nyquist (W even, WR-1 == W//2)
    ph2 = (2.0 * np.pi * np.outer(mm, pp) / H)[:, None, :, None] + \
          (2.0 * np.pi * np.outer(kk, ww) / W)[None, :, None, :]     # (m,k,p,w)
    g = np.zeros((H, W, H, W), np.float64)
    g[:, :WR, :, :] = np.cos(ph2) * wgt[None, :, None, None] / (H * W)
    return (fre.reshape(HW, HW).astype(np.float32),
            fim.reshape(HW, HW).astype(np.float32),
            g.reshape(HW, HW).astype(np.float32))


# ------------------------------ boundary tap masks -----------------------------
def _build_masks(lanes):
    """(9, 8, lanes) f32 masks: mask[t] zeroes tap (dy,dx) contributions whose
    source position lies outside the valid grid (16x16 image / 16x9 spectrum).
    Also kills the lane wrap-around of pltpu.roll across samples/array ends."""
    lane = np.arange(lanes)
    col = lane % W
    row = (lane // W) % H

    def mk(valid_w):
        m = np.zeros((9, 8, lanes), np.float32)
        for t, (dy, dx) in enumerate(TAPS):
            ok = ((row + dy >= 0) & (row + dy < H) &
                  (col + dx >= 0) & (col + dx < valid_w))
            m[t] = np.broadcast_to(ok.astype(np.float32), (8, lanes))
        return m

    return mk(W), mk(WR)


# ------------------------------ roll-direction probe ----------------------------
_ROLL_SIGN = None


def _roll_sign():
    """Probe pltpu.roll once (memoized, runs before the fused kernel is traced)
    so the conv neighborhoods never silently flip."""
    global _ROLL_SIGN
    if _ROLL_SIGN is None:
        def k(x_ref, o_ref):
            o_ref[...] = pltpu.roll(x_ref[...], 1, axis=1)

        x = jnp.broadcast_to(jnp.arange(HW, dtype=jnp.float32)[None, :], (8, HW))
        vmem = pl.BlockSpec(memory_space=pltpu.MemorySpace.VMEM)
        out = pl.pallas_call(
            k, out_shape=jax.ShapeDtypeStruct((8, HW), jnp.float32),
            in_specs=[vmem], out_specs=vmem)(x)
        v = float(out[0, 0])
        if v == float(HW - 1):       # np.roll semantics: out[i] = x[i - shift]
            _ROLL_SIGN = -1
        elif v == 1.0:               # opposite convention: out[i] = x[i + shift]
            _ROLL_SIGN = 1
        else:
            raise RuntimeError(f"unexpected pltpu.roll behaviour: got {v}")
    return _ROLL_SIGN


def _samples_per_step():
    """v7x has 2 TensorCores -> 1 sample/grid step + 'parallel' grid uses both
    cores; single-TC v5e/v6e fold 2 samples onto the lane axis of one step."""
    try:
        kind = jax.devices()[0].device_kind.lower()
    except Exception:
        return 2
    if "v7" in kind or "7x" in kind:
        return 1
    return 2


# ------------------------------ fused Pallas kernel ---------------------------
def _make_kernel(gb, roll_sign):
    lanes = gb * HW

    def kernel(x_ref, dft_ref, w_ref, b_ref, mimg_ref, mspec_ref, o_ref,
               skips_ref, x1_ref):

        def gelu(v):
            # TODO(synk): tanh-form GELU (~1e-3 abs dev) stands in for the exact
            # erf GELU of nn.GELU; much cheaper on the serial critical path.
            return 0.5 * v * (1.0 + jnp.tanh(
                _SQRT_2_OVER_PI * (v + _GELU_C * v * v * v)))

        def shifted(a, dy, dx):
            # out[:, p] = a[:, (p + dy*W + dx) mod lanes]; wrapped lanes (array
            # ends and cross-sample boundaries) are always masked afterwards.
            d = dy * W + dx
            if d == 0:
                return a
            return pltpu.roll(a, (roll_sign * d) % lanes, axis=1)

        def wmat(r0, nrows, ncols):
            return w_ref[r0:r0 + nrows, 0:ncols].astype(jnp.bfloat16)

        def conv3x3_acc(xin, w_bf, mref):
            # xin: (8, lanes) f32; w_bf: (Cout, 72) bf16, tap-major/channel-minor.
            pieces = [shifted(xin, dy, dx) * mref[t]
                      for t, (dy, dx) in enumerate(TAPS)]
            patches = jnp.concatenate(pieces, axis=0).astype(jnp.bfloat16)
            return jnp.dot(w_bf, patches, preferred_element_type=jnp.float32)

        def rfft2(xl):
            # (8, lanes) image -> (16, lanes) spectrum [Re rows 0-7 | Im rows 8-15]
            xb = xl.astype(jnp.bfloat16)
            zr, zi = [], []
            for s in range(gb):
                blk = xb[:, s * HW:(s + 1) * HW]
                zr.append(jnp.dot(blk, dft_ref[ROW_FRE:ROW_FRE + HW, :],
                                  preferred_element_type=jnp.float32))
                zi.append(jnp.dot(blk, dft_ref[ROW_FIM:ROW_FIM + HW, :],
                                  preferred_element_type=jnp.float32))
            zr = zr[0] if gb == 1 else jnp.concatenate(zr, axis=1)
            zi = zi[0] if gb == 1 else jnp.concatenate(zi, axis=1)
            return jnp.concatenate([zr, zi], axis=0)

        def irfft2(h):
            # (8, lanes) padded spectrum -> (8, lanes) image (cols >= 9 ignored,
            # matching torch irfft2 of a real tensor / irfft2(x, dim) cropping).
            hb = h.astype(jnp.bfloat16)
            outs = [jnp.dot(hb[:, s * HW:(s + 1) * HW],
                            dft_ref[ROW_GI:ROW_GI + HW, :],
                            preferred_element_type=jnp.float32)
                    for s in range(gb)]
            return outs[0] if gb == 1 else jnp.concatenate(outs, axis=1)

        def lift(i, x):
            # 1x1 conv with Cin=1 == per-output-channel scale + bias, then GELU.
            bb = BROWS * i
            return gelu(b_ref[bb:bb + 8, :] * x + b_ref[bb + 8:bb + 16, :])

        def encoder(i, x):
            wb = WROWS * i
            bb = BROWS * i
            xl = lift(i, x)                                   # (8, lanes)
            spec = rfft2(xl)                                  # (16, lanes) f32
            if i == 0:
                x1_ref[...] = xl                              # x1 -> decoder
            if 1 <= i <= 5:
                skips_ref[i - 1] = spec                       # x2..x6 -> skip
            spec_bf = spec.astype(jnp.bfloat16)
            acc = jnp.dot(wmat(wb, 8, 16), spec_bf,
                          preferred_element_type=jnp.float32)
            if i >= 6:                                        # skiplink conv1x1
                acc = acc + jnp.dot(wmat(wb + 8, 8, 16),
                                    skips_ref[10 - i].astype(jnp.bfloat16),
                                    preferred_element_type=jnp.float32)
            h = gelu(acc + b_ref[bb + 16:bb + 24, :])
            h = gelu(conv3x3_acc(h, wmat(wb + 16, 8, 72), mspec_ref)
                     + b_ref[bb + 24:bb + 32, :])
            h = gelu(conv3x3_acc(h, wmat(wb + 24, 8, 72), mspec_ref)
                     + b_ref[bb + 32:bb + 40, :])
            img = irfft2(h)                                   # (8, lanes)
            # project: block 0 has no lift concat -> its lift-part weights are 0.
            out = gelu(conv3x3_acc(img, wmat(wb + 32, 1, 72), mimg_ref)
                       + conv3x3_acc(xl, wmat(wb + 40, 1, 72), mimg_ref)
                       + b_ref[bb + 40:bb + 41, :])
            return out                                        # (1, lanes)

        def decoder(i, x):
            wb = WROWS * i
            bb = BROWS * i
            xl = lift(i, x)
            h = gelu(conv3x3_acc(xl, wmat(wb, 8, 72), mimg_ref)
                     + b_ref[bb + 16:bb + 24, :])
            h = gelu(conv3x3_acc(h, wmat(wb + 16, 8, 72), mimg_ref)
                     + b_ref[bb + 24:bb + 32, :])
            h = gelu(conv3x3_acc(h, wmat(wb + 24, 8, 72), mimg_ref)
                     + b_ref[bb + 32:bb + 40, :])
            img = irfft2(h)
            out = gelu(conv3x3_acc(img, wmat(wb + 32, 1, 72), mimg_ref)
                       + conv3x3_acc(x1_ref[...], wmat(wb + 40, 1, 72), mimg_ref)
                       + b_ref[bb + 40:bb + 41, :])
            return gelu(out)        # outputActivate: second GELU on top of project

        x = x_ref[0]                                          # (1, lanes)
        for i in range(11):
            x = encoder(i, x)
        o_ref[0] = decoder(11, x)

    return kernel


# ------------------------------ host-side wrapper ------------------------------
def build_forward(gb=None):
    """Builds the fused forward.  The roll-direction probe and chip detection
    run here (outside jit) so the kernel is parameterized statically."""
    if gb is None:
        gb = _samples_per_step()
    roll_sign = _roll_sign()
    lanes = gb * HW
    mimg_np, mspec_np = _build_masks(lanes)
    mimg = jnp.asarray(mimg_np)
    mspec = jnp.asarray(mspec_np)
    kernel = _make_kernel(gb, roll_sign)

    def whole(a):
        return pl.BlockSpec(a.shape, lambda g, n=a.ndim: (0,) * n)

    def forward(params, x):
        B = x.shape[0]
        G = -(-B // gb)
        xf = x.reshape(B, HW).astype(jnp.float32)
        if G * gb != B:
            xf = jnp.pad(xf, ((0, G * gb - B), (0, 0)))
        xg = xf.reshape(G, 1, lanes)

        ops = (params["dft"], params["wblk"], params["bias"], mimg, mspec)
        out = pl.pallas_call(
            kernel,
            out_shape=jax.ShapeDtypeStruct((G, 1, lanes), jnp.float32),
            grid_spec=pltpu.PrefetchScalarGridSpec(
                num_scalar_prefetch=0,
                grid=(G,),
                in_specs=[pl.BlockSpec((1, 1, lanes), lambda g: (g, 0, 0))]
                         + [whole(a) for a in ops],
                out_specs=pl.BlockSpec((1, 1, lanes), lambda g: (g, 0, 0)),
                scratch_shapes=[
                    pltpu.VMEM((5, 16, lanes), jnp.float32),  # skip spectra x2..x6
                    pltpu.VMEM((8, lanes), jnp.float32),      # x1 (block-0 lift)
                ]),
            compiler_params=pltpu.CompilerParams(
                dimension_semantics=("parallel",)),
        )(xg, *ops)
        return out.reshape(G * gb, HW)[:B].reshape(B, IN_CH, H, W)

    return forward


# ------------------------------ parameter handling ------------------------------
def _conv_init(key, cout, cin, kh, kw):
    k1, k2 = jax.random.split(key)
    bound = 1.0 / np.sqrt(cin * kh * kw)
    w = jax.random.uniform(k1, (cout, cin, kh, kw), jnp.float32, -bound, bound)
    b = jax.random.uniform(k2, (cout,), jnp.float32, -bound, bound)
    return w, b


def init_raw_params(key):
    """Torch-layout Conv2d parameters for the 12 blocks (default init)."""
    blocks = []
    for i in range(N_BLOCKS):
        inverse = i == 11
        skip = 6 <= i <= 10
        c = 1 if inverse else (4 * FOLD if skip else 2 * FOLD)
        d = 1 if inverse else FOLD
        key, *ks = jax.random.split(key, 6)
        p = {}
        p["lift_w"], p["lift_b"] = _conv_init(ks[0], PROJ_CH, IN_CH, 1, 1)
        if inverse:
            p["c1_w"], p["c1_b"] = _conv_init(ks[1], HID_CH, PROJ_CH * c, 3, 3)
        else:
            p["c1_w"], p["c1_b"] = _conv_init(ks[1], HID_CH, PROJ_CH * c, 1, 1)
        p["c2_w"], p["c2_b"] = _conv_init(ks[2], HID_CH, HID_CH, 3, 3)
        p["c3_w"], p["c3_b"] = _conv_init(ks[3], PROJ_CH * d, HID_CH, 3, 3)
        proj_in = PROJ_CH if (i == 0 and not inverse) else 2 * PROJ_CH
        p["proj_w"], p["proj_b"] = _conv_init(ks[4], IN_CH, proj_in, 3, 3)
        blocks.append(p)
    return blocks


def pack_params(raw):
    """Repack torch-layout weights into three slabs:
       dft  (768, 256) bf16 : F_re | F_im | G
       wblk (576, 256) f32  : per-block matmul weights (48 rows / block)
       bias (576, 1)   f32  : per-block biases + lift scale/bias (48 rows / block)"""
    fre, fim, gop = _dft_operators()
    dft = np.concatenate([fre, fim, gop], axis=0)

    wblk = np.zeros((N_BLOCKS * WROWS, 256), np.float32)
    bias = np.zeros((N_BLOCKS * BROWS, 1), np.float32)

    fft8 = [0, 1, 2, 3, 8, 9, 10, 11]   # spectrum rows: Re ch0-3 -> 0-3, Im -> 8-11
    ident8 = list(range(8))
    lift4 = [0, 1, 2, 3]

    def pack3(dst, w, cin_map, cin_pad=8):
        w = np.asarray(w, np.float32)          # (cout, cin, 3, 3)
        cout = w.shape[0]
        for t, (dy, dx) in enumerate(TAPS):
            for ci, r in enumerate(cin_map):
                dst[:cout, t * cin_pad + r] = w[:, ci, dy + 1, dx + 1]

    def pack1(dst, w, cin_map):
        w = np.asarray(w, np.float32)
        cout = w.shape[0]
        for ci, r in enumerate(cin_map):
            dst[:cout, r] = w[:, ci, 0, 0]

    for i, p in enumerate(raw):
        wb = WROWS * i
        bb = BROWS * i
        bias[bb:bb + PROJ_CH, 0] = np.asarray(p["lift_w"], np.float32).reshape(PROJ_CH)
        bias[bb + 8:bb + 8 + PROJ_CH, 0] = np.asarray(p["lift_b"], np.float32)

        c1w = np.asarray(p["c1_w"], np.float32)
        if i == 11:                                    # decoder: 3x3 conv, cin=4
            pack3(wblk[wb:wb + 8], c1w, lift4, 8)
        elif i >= 6:                                   # skip blocks: 1x1, cin=16
            pack1(wblk[wb:wb + 8], c1w[:, :2 * PROJ_CH], fft8)       # current x_fft
            pack1(wblk[wb + 8:wb + 16], c1w[:, 2 * PROJ_CH:], fft8)  # skip y
        else:                                          # 1x1, cin=8
            pack1(wblk[wb:wb + 8], c1w, fft8)
        bias[bb + 16:bb + 24, 0] = np.asarray(p["c1_b"], np.float32)

        pack3(wblk[wb + 16:wb + 24], p["c2_w"], ident8, 8)
        bias[bb + 24:bb + 32, 0] = np.asarray(p["c2_b"], np.float32)

        c3w = np.asarray(p["c3_w"], np.float32)
        pack3(wblk[wb + 24:wb + 32], c3w, ident8, 8)
        bias[bb + 32:bb + 32 + c3w.shape[0], 0] = np.asarray(p["c3_b"], np.float32)

        projw = np.asarray(p["proj_w"], np.float32)    # (1, cin, 3, 3)
        pack3(wblk[wb + 32:wb + 33], projw[:, :PROJ_CH], lift4, 8)   # irfft part
        if projw.shape[1] > PROJ_CH:                                  # lift / y part
            pack3(wblk[wb + 40:wb + 41], projw[:, PROJ_CH:], lift4, 8)
        bias[bb + 40, 0] = float(np.asarray(p["proj_b"], np.float32)[0])

    return {
        "dft": jnp.asarray(dft).astype(jnp.bfloat16),
        "wblk": jnp.asarray(wblk),
        "bias": jnp.asarray(bias),
    }


# ------------------------------------ main --------------------------------------
if __name__ == "__main__":
    key = jax.random.PRNGKey(0)
    kp, kx = jax.random.split(key)
    raw = init_raw_params(kp)
    params = pack_params(raw)
    x = jax.random.normal(kx, (2, IN_CH, H, W), jnp.float32)

    fwd = jax.jit(build_forward())          # probe + chip detect run here, pre-jit
    out = jax.block_until_ready(fwd(params, x))

    assert out.shape == (2, IN_CH, H, W), out.shape
    assert bool(jnp.all(jnp.isfinite(out)))
    print("KERNEL_OK")
</pallas_src>

<mosaic_0001>
module attributes {stable_mosaic.version = 11 : i64} {
  func.func @k(%arg0: memref<8x256xf32, #tpu.memory_space<vmem>>, %arg1: memref<8x256xf32, #tpu.memory_space<vmem>>) attributes {dimension_semantics = [], scalar_prefetch = 0 : i64, scratch_operands = 0 : i64, tpu.core_type = #tpu.core_type<tc>} {
    %c0 = arith.constant 0 : index
    %c0_0 = arith.constant 0 : index
    %0 = vector.load %arg0[%c0, %c0_0] : memref<8x256xf32, #tpu.memory_space<vmem>>, vector<8x256xf32>
    %c1_i32 = arith.constant 1 : i32
    %1 = tpu.dynamic_rotate %0 by %c1_i32 dim 1 : vector<8x256xf32>, i32 -> vector<8x256xf32>
    %c0_1 = arith.constant 0 : index
    %c0_2 = arith.constant 0 : index
    %2 = vector.load %arg1[%c0_1, %c0_2] : memref<8x256xf32, #tpu.memory_space<vmem>>, vector<8x256xf32>
    tpu.vector_store %arg1[%c0_1, %c0_2], %1 {strides = array<i32>} : memref<8x256xf32, #tpu.memory_space<vmem>>, vector<8x256xf32>,
    return
  }
}

</mosaic_0001>

<bundles_post_ra>
// kernel: tpu_custom_call.1
= control target key start
LH: loop header
LB: loop body
LE: loop exit
PB: predicated region body
PF: predicated region fallthrough
CT: control target
= control target key end

     0   :  { %6 = vsyncpa [#allocation3], 0  ;;  %s127_s0 = inlined_call_operand.hbm [shape: f32[8,256], index: 0, kind: input, shape index: {}]   ;;  %s128_s1 = inlined_call_operand.hbm [shape: f32[8,256], index: 1, kind: output, shape index: {}]  }
   0x1   :  { %7 = vsyncpa [#allocation4], 0  ;;  %s13_s8 = sshll.u32 %s127_s0, 4  ;;  %s108_s9 = smov [#allocation2]   ;;  %s14_s8 = int_to_ptr.hbm [resolvable:$true] %s13_s8 }
   0x2   :  { %s15_s10 = sshll.u32 %s108_s9, 4  ;;  %s16_s10 = int_to_ptr.vmem [resolvable:$true] %s15_s10 }
   0x3   :  { %18 = dma.hbm_to_vmem [thread:$0]  %s14_s8, 256, %s16_s10, [#allocation3]  }
   0x4   :  { %104 = dma.done.wait [#allocation3], 256  }
   0x5   :  { %105 = vsyncadd [#allocation3], 4294967040  ;;  %v23_v0 = vld [vmem:[#allocation2] sm:$0xff]  ;;  %s109_s11 = smov 1   ;;  %v24_v1 = vld [vmem:[#allocation2 + $0x8] sm:$0xff]  ;;  %v29_v2 = vlaneseq  ;;  %s110_s12 = smov [#allocation5]  }
   0x6   :  { %25 = vrot.lane.b32.xlu0 %v23_v0, %s109_s11  ;;  %s41_s13 = sshll.u32 %s110_s12, 4  ;;  %s43_s15 = sshll.u32 %s128_s1, 4  ;;  %s42_s13 = int_to_ptr.vmem [resolvable:$true] %s41_s13  ;;  %s44_s15 = int_to_ptr.hbm [resolvable:$true] %s43_s15 }
   0x7   :  { %v30_v4 = vand.u32 127, %v29_v2 }
   0x9   :  { %vm31_vm0 = vcmp.lt.s32.totalorder %v30_v4, 1 }
   0xe   :  { %27 = vrot.lane.b32.xlu0 %v24_v1, %s109_s11 }
  0x78   :  { %v26_v3 = vpop.permute.xlu0 %25 }
  0x80   :  { %v28_v5 = vpop.permute.xlu0 %27 }
  0x81   :  { %v32_v6 = vsel %vm31_vm0, %v26_v3, %v28_v5  ;;  %v33_v7 = vsel %vm31_vm0, %v28_v5, %v26_v3 }
  0x82   :  { %34 = vst [vmem:[#allocation5] sm:$0xff] %v33_v7 }
  0x83   :  { %35 = vst [vmem:[#allocation5 + $0x8] sm:$0xff] %v32_v6 }
  0x84   :  { %46 = dma.vmem_to_hbm [thread:$0]  %s42_s13, 256, %s44_s15, [#allocation4]  }
  0x85   :  { %106 = dma.done.wait [#allocation4], 256  }
  0x86   :  { %107 = vsyncadd [#allocation4], 4294967040 }
  0x87   :  { %51 = vsyncpa [#allocation3], 1 }
  0x88   :  { %52 = vsyncpa [#allocation4], 1 }

</bundles_post_ra>
